<compile_context>
chip_gen: v7x
topology: tpu7x:2x2x1
jax: 0.10.0
libtpu: 0.0.40
codegen_flags: <defaults>
</compile_context>

<pallas_src>
import jax
import jax.numpy as jnp
from jax.experimental import pallas as pl
from jax.experimental.pallas import tpu as pltpu

LANE_TILE = 256  # batch-tile granularity; batch lives on the lane axis


def mlp_actor_kernel(obs_ref, w1_ref, b1_ref, w2_ref, b2_ref, w3_ref, b3_ref,
                     scale_ref, shift_ref, out_ref):
    cdt = w1_ref.dtype  # MXU input dtype (bf16); accumulation stays f32.

    x = obs_ref[...].astype(cdt)                                  # (obs_dim, tb)

    # Hidden layer 1: W1 @ x + b1, ReLU                          -> (h1, tb)
    h = jnp.dot(w1_ref[...], x, preferred_element_type=jnp.float32) + b1_ref[...]
    h = jnp.maximum(h, 0.0)

    # Hidden layer 2: W2 @ h + b2, ReLU                          -> (h2, tb)
    h = jnp.dot(w2_ref[...], h.astype(cdt),
                preferred_element_type=jnp.float32) + b2_ref[...]
    h = jnp.maximum(h, 0.0)

    # Output layer: W3 @ h + b3, tanh, rescale to [act_min, act_max]
    y = jnp.dot(w3_ref[...], h.astype(cdt),
                preferred_element_type=jnp.float32) + b3_ref[...]
    y = jnp.tanh(y)
    out_ref[...] = y * scale_ref[...] + shift_ref[...]           # (act_dim, tb)


def _round_up(x, m):
    return (x + m - 1) // m * m


def mlp_actor_forward(obs, params, act_min, act_max, *, tile_batch=4096):
    """obs: (batch, obs_dim) f32.
    params: w{1,2,3} bf16 in PyTorch (out,in) layout, b{1,2,3} f32 (out,1).
    act_min/act_max: broadcastable to (act_dim,) f32."""
    batch, obs_dim = obs.shape
    h1 = params["w1"].shape[0]
    h2 = params["w2"].shape[0]
    act_dim = params["w3"].shape[0]

    # Fold the action rescale into two (act_dim, 1) columns.
    scale = (0.5 * (act_max - act_min)).reshape(act_dim, 1).astype(jnp.float32)
    shift = (0.5 * (act_max + act_min)).reshape(act_dim, 1).astype(jnp.float32)

    # Batch tiling: lane-aligned tiles; keep grid >= 2 when there is enough
    # work so both v7x TensorCores are used ("parallel" axis).
    padded = _round_up(batch, LANE_TILE)
    tb = min(_round_up(tile_batch, LANE_TILE), padded)
    if padded >= 2 * LANE_TILE:
        tb = max((padded // 2) // LANE_TILE * LANE_TILE, LANE_TILE)
        tb = min(tb, _round_up(tile_batch, LANE_TILE))
    padded = _round_up(padded, tb)
    grid = (padded // tb,)

    # Stream obs transposed: (obs_dim, padded), batch on lanes.
    obs_t = jnp.pad(obs, ((0, padded - batch), (0, 0))).T

    const = lambda i: (0, 0)  # resident operands: same block every grid step

    flops = 2 * padded * (obs_dim * h1 + h1 * h2 + h2 * act_dim)
    bytes_accessed = (
        padded * obs_dim * 4 + padded * act_dim * 4
        + sum(int(v.size) * v.dtype.itemsize for v in params.values())
        + 2 * act_dim * 4)

    out_t = pl.pallas_call(
        mlp_actor_kernel,
        out_shape=jax.ShapeDtypeStruct((act_dim, padded), jnp.float32),
        grid=grid,
        in_specs=[
            pl.BlockSpec((obs_dim, tb), lambda i: (0, i)),   # obs^T: streamed
            pl.BlockSpec((h1, obs_dim), const),              # w1: resident
            pl.BlockSpec((h1, 1), const),                    # b1
            pl.BlockSpec((h2, h1), const),                   # w2
            pl.BlockSpec((h2, 1), const),                    # b2
            pl.BlockSpec((act_dim, h2), const),              # w3
            pl.BlockSpec((act_dim, 1), const),               # b3
            pl.BlockSpec((act_dim, 1), const),               # scale
            pl.BlockSpec((act_dim, 1), const),               # shift
        ],
        out_specs=pl.BlockSpec((act_dim, tb), lambda i: (0, i)),
        compiler_params=pltpu.CompilerParams(
            dimension_semantics=("parallel",),
            vmem_limit_bytes=32 * 1024 * 1024),
        cost_estimate=pl.CostEstimate(
            flops=flops,
            transcendentals=padded * act_dim,
            bytes_accessed=bytes_accessed),
    )(obs_t,
      params["w1"], params["b1"],
      params["w2"], params["b2"],
      params["w3"], params["b3"],
      scale, shift)

    # Transpose back to (batch, act_dim) for the caller.
    return out_t.T[:batch]


def init_params(key, obs_dim, hidden_sizes, act_dim, *, weight_dtype=jnp.bfloat16):
    """Deterministic synthetic init; weights stored PyTorch-style (out, in)."""
    sizes = [obs_dim] + list(hidden_sizes) + [act_dim]
    params = {}
    for i in range(len(sizes) - 1):
        key, kw, kb = jax.random.split(key, 3)
        bound = float(sizes[i]) ** -0.5
        w = jax.random.uniform(kw, (sizes[i + 1], sizes[i]), jnp.float32,
                               -bound, bound)
        b = jax.random.uniform(kb, (sizes[i + 1], 1), jnp.float32,
                               -bound, bound)
        params[f"w{i + 1}"] = w.astype(weight_dtype)   # MXU inputs in bf16
        params[f"b{i + 1}"] = b                        # biases stay f32
    return params


def reference_forward(obs, params, act_min, act_max):
    """Pure-JAX reference with the same bf16-input / f32-accumulate contract.
    Weights are (out, in); computes x @ W^T + b like torch.nn.Linear."""
    cdt = params["w1"].dtype

    def lin(x, w, b):
        return jnp.dot(x.astype(cdt), w.T,
                       preferred_element_type=jnp.float32) + b.reshape(1, -1)

    h = jnp.maximum(lin(obs, params["w1"], params["b1"]), 0.0)
    h = jnp.maximum(lin(h, params["w2"], params["b2"]), 0.0)
    y = jnp.tanh(lin(h, params["w3"], params["b3"]))
    return (y + 1.0) / 2.0 * (act_max - act_min) + act_min


if __name__ == "__main__":
    key = jax.random.PRNGKey(0)

    batch, obs_dim, act_dim = 8, 12, 4
    hidden_sizes = (32, 32)   # activation assumed ReLU (standard DDPG config)

    key, k_obs, k_par = jax.random.split(key, 3)
    obs = jax.random.normal(k_obs, (batch, obs_dim), jnp.float32)
    params = init_params(k_par, obs_dim, hidden_sizes, act_dim)

    # Per-action-dim bounds.
    act_min = jnp.array([[-1.0, -2.0, 0.0, -0.5]], jnp.float32)   # (1, act_dim)
    act_max = jnp.array([[1.0, 2.0, 3.0, 0.5]], jnp.float32)      # (1, act_dim)

    out = mlp_actor_forward(obs, params, act_min, act_max)
    jax.block_until_ready(out)

    ref = reference_forward(obs, params, act_min, act_max)
    assert out.shape == (batch, act_dim)
    assert jnp.allclose(out, ref, atol=5e-3, rtol=5e-3), "mismatch vs reference"

    print("KERNEL_OK")
</pallas_src>

<mosaic_0001>
module attributes {stable_mosaic.version = 11 : i64} {
  func.func @mlp_actor_kernel(%arg0: i32, %arg1: memref<12x256xf32, #tpu.memory_space<vmem>>, %arg2: memref<32x12xbf16, #tpu.memory_space<vmem>>, %arg3: memref<32x1xf32, #tpu.memory_space<vmem>>, %arg4: memref<32x32xbf16, #tpu.memory_space<vmem>>, %arg5: memref<32x1xf32, #tpu.memory_space<vmem>>, %arg6: memref<4x32xbf16, #tpu.memory_space<vmem>>, %arg7: memref<4x1xf32, #tpu.memory_space<vmem>>, %arg8: memref<4x1xf32, #tpu.memory_space<vmem>>, %arg9: memref<4x1xf32, #tpu.memory_space<vmem>>, %arg10: memref<4x256xf32, #tpu.memory_space<vmem>>) attributes {dimension_semantics = [#tpu.dimension_semantics<parallel>], iteration_bounds = array<i64: 1>, scalar_prefetch = 0 : i64, scratch_operands = 0 : i64, tpu.core_type = #tpu.core_type<tc>, window_params = [{transform_indices = @transform_0, window_bounds = array<i64: 12, 256>}, {pipeline_mode = #tpu.pipeline_mode<synchronous>, transform_indices = @transform_1, window_bounds = array<i64: 32, 12>}, {pipeline_mode = #tpu.pipeline_mode<synchronous>, transform_indices = @transform_2, window_bounds = array<i64: 32, 1>}, {pipeline_mode = #tpu.pipeline_mode<synchronous>, transform_indices = @transform_3, window_bounds = array<i64: 32, 32>}, {pipeline_mode = #tpu.pipeline_mode<synchronous>, transform_indices = @transform_4, window_bounds = array<i64: 32, 1>}, {pipeline_mode = #tpu.pipeline_mode<synchronous>, transform_indices = @transform_5, window_bounds = array<i64: 4, 32>}, {pipeline_mode = #tpu.pipeline_mode<synchronous>, transform_indices = @transform_6, window_bounds = array<i64: 4, 1>}, {pipeline_mode = #tpu.pipeline_mode<synchronous>, transform_indices = @transform_7, window_bounds = array<i64: 4, 1>}, {pipeline_mode = #tpu.pipeline_mode<synchronous>, transform_indices = @transform_8, window_bounds = array<i64: 4, 1>}, {transform_indices = @transform_9, window_bounds = array<i64: 4, 256>}]} {
    %c0 = arith.constant 0 : index
    %c0_0 = arith.constant 0 : index
    %0 = vector.load %arg1[%c0, %c0_0] : memref<12x256xf32, #tpu.memory_space<vmem>>, vector<12x256xf32>
    %1 = arith.truncf %0 : vector<12x256xf32> to vector<12x256xbf16>
    %c0_1 = arith.constant 0 : index
    %c0_2 = arith.constant 0 : index
    %2 = vector.load %arg2[%c0_1, %c0_2] : memref<32x12xbf16, #tpu.memory_space<vmem>>, vector<32x12xbf16>
    %cst = arith.constant dense<0.000000e+00> : vector<32x256xf32>
    %3 = tpu.matmul %2, %1, %cst {dimension_numbers = #tpu.dot_dimension_numbers<[1], [0], [0], [1], [0, 0, 1, 1], [], []>} : vector<32x12xbf16>, vector<12x256xbf16>, vector<32x256xf32> -> vector<32x256xf32>
    %c0_3 = arith.constant 0 : index
    %c0_4 = arith.constant 0 : index
    %4 = vector.load %arg3[%c0_3, %c0_4] : memref<32x1xf32, #tpu.memory_space<vmem>>, vector<32x1xf32>
    %5 = vector.broadcast %4 : vector<32x1xf32> to vector<32x256xf32>
    %6 = arith.addf %3, %5 : vector<32x256xf32>
    %cst_5 = arith.constant 0.000000e+00 : f32
    %7 = vector.broadcast %cst_5 : f32 to vector<32x256xf32>
    %8 = arith.maximumf %6, %7 : vector<32x256xf32>
    %c0_6 = arith.constant 0 : index
    %c0_7 = arith.constant 0 : index
    %9 = vector.load %arg4[%c0_6, %c0_7] : memref<32x32xbf16, #tpu.memory_space<vmem>>, vector<32x32xbf16>
    %10 = arith.truncf %8 : vector<32x256xf32> to vector<32x256xbf16>
    %cst_8 = arith.constant dense<0.000000e+00> : vector<32x256xf32>
    %11 = tpu.matmul %9, %10, %cst_8 {dimension_numbers = #tpu.dot_dimension_numbers<[1], [0], [0], [1], [0, 0, 1, 1], [], []>} : vector<32x32xbf16>, vector<32x256xbf16>, vector<32x256xf32> -> vector<32x256xf32>
    %c0_9 = arith.constant 0 : index
    %c0_10 = arith.constant 0 : index
    %12 = vector.load %arg5[%c0_9, %c0_10] : memref<32x1xf32, #tpu.memory_space<vmem>>, vector<32x1xf32>
    %13 = vector.broadcast %12 : vector<32x1xf32> to vector<32x256xf32>
    %14 = arith.addf %11, %13 : vector<32x256xf32>
    %cst_11 = arith.constant 0.000000e+00 : f32
    %15 = vector.broadcast %cst_11 : f32 to vector<32x256xf32>
    %16 = arith.maximumf %14, %15 : vector<32x256xf32>
    %c0_12 = arith.constant 0 : index
    %c0_13 = arith.constant 0 : index
    %17 = vector.load %arg6[%c0_12, %c0_13] : memref<4x32xbf16, #tpu.memory_space<vmem>>, vector<4x32xbf16>
    %18 = arith.truncf %16 : vector<32x256xf32> to vector<32x256xbf16>
    %cst_14 = arith.constant dense<0.000000e+00> : vector<4x256xf32>
    %19 = tpu.matmul %17, %18, %cst_14 {dimension_numbers = #tpu.dot_dimension_numbers<[1], [0], [0], [1], [0, 0, 1, 1], [], []>} : vector<4x32xbf16>, vector<32x256xbf16>, vector<4x256xf32> -> vector<4x256xf32>
    %c0_15 = arith.constant 0 : index
    %c0_16 = arith.constant 0 : index
    %20 = vector.load %arg7[%c0_15, %c0_16] : memref<4x1xf32, #tpu.memory_space<vmem>>, vector<4x1xf32>
    %21 = vector.broadcast %20 : vector<4x1xf32> to vector<4x256xf32>
    %22 = arith.addf %19, %21 : vector<4x256xf32>
    %23 = math.tanh %22 : vector<4x256xf32>
    %c0_17 = arith.constant 0 : index
    %c0_18 = arith.constant 0 : index
    %24 = vector.load %arg8[%c0_17, %c0_18] : memref<4x1xf32, #tpu.memory_space<vmem>>, vector<4x1xf32>
    %25 = vector.broadcast %24 : vector<4x1xf32> to vector<4x256xf32>
    %26 = arith.mulf %23, %25 : vector<4x256xf32>
    %c0_19 = arith.constant 0 : index
    %c0_20 = arith.constant 0 : index
    %27 = vector.load %arg9[%c0_19, %c0_20] : memref<4x1xf32, #tpu.memory_space<vmem>>, vector<4x1xf32>
    %28 = vector.broadcast %27 : vector<4x1xf32> to vector<4x256xf32>
    %29 = arith.addf %26, %28 : vector<4x256xf32>
    %c0_21 = arith.constant 0 : index
    %c0_22 = arith.constant 0 : index
    %30 = vector.load %arg10[%c0_21, %c0_22] : memref<4x256xf32, #tpu.memory_space<vmem>>, vector<4x256xf32>
    tpu.vector_store %arg10[%c0_21, %c0_22], %29 {strides = array<i32>} : memref<4x256xf32, #tpu.memory_space<vmem>>, vector<4x256xf32>,
    return
  }
  func.func @transform_0(%arg0: i32) -> (i32, i32) {
    %c0_i32 = arith.constant 0 : i32
    %c0_i32_0 = arith.constant 0 : i32
    return %c0_i32, %arg0 : i32, i32
  }
  func.func @transform_1(%arg0: i32) -> (i32, i32) {
    %c0_i32 = arith.constant 0 : i32
    %c0_i32_0 = arith.constant 0 : i32
    %c0_i32_1 = arith.constant 0 : i32
    return %c0_i32, %c0_i32_0 : i32, i32
  }
  func.func @transform_2(%arg0: i32) -> (i32, i32) {
    %c0_i32 = arith.constant 0 : i32
    %c0_i32_0 = arith.constant 0 : i32
    %c0_i32_1 = arith.constant 0 : i32
    return %c0_i32, %c0_i32_0 : i32, i32
  }
  func.func @transform_3(%arg0: i32) -> (i32, i32) {
    %c0_i32 = arith.constant 0 : i32
    %c0_i32_0 = arith.constant 0 : i32
    %c0_i32_1 = arith.constant 0 : i32
    return %c0_i32, %c0_i32_0 : i32, i32
  }
  func.func @transform_4(%arg0: i32) -> (i32, i32) {
    %c0_i32 = arith.constant 0 : i32
    %c0_i32_0 = arith.constant 0 : i32
    %c0_i32_1 = arith.constant 0 : i32
    return %c0_i32, %c0_i32_0 : i32, i32
  }
  func.func @transform_5(%arg0: i32) -> (i32, i32) {
    %c0_i32 = arith.constant 0 : i32
    %c0_i32_0 = arith.constant 0 : i32
    %c0_i32_1 = arith.constant 0 : i32
    return %c0_i32, %c0_i32_0 : i32, i32
  }
  func.func @transform_6(%arg0: i32) -> (i32, i32) {
    %c0_i32 = arith.constant 0 : i32
    %c0_i32_0 = arith.constant 0 : i32
    %c0_i32_1 = arith.constant 0 : i32
    return %c0_i32, %c0_i32_0 : i32, i32
  }
  func.func @transform_7(%arg0: i32) -> (i32, i32) {
    %c0_i32 = arith.constant 0 : i32
    %c0_i32_0 = arith.constant 0 : i32
    %c0_i32_1 = arith.constant 0 : i32
    return %c0_i32, %c0_i32_0 : i32, i32
  }
  func.func @transform_8(%arg0: i32) -> (i32, i32) {
    %c0_i32 = arith.constant 0 : i32
    %c0_i32_0 = arith.constant 0 : i32
    %c0_i32_1 = arith.constant 0 : i32
    return %c0_i32, %c0_i32_0 : i32, i32
  }
  func.func @transform_9(%arg0: i32) -> (i32, i32) {
    %c0_i32 = arith.constant 0 : i32
    %c0_i32_0 = arith.constant 0 : i32
    return %c0_i32, %arg0 : i32, i32
  }
}

</mosaic_0001>

<bundles_post_ra>
// kernel: tpu_custom_call.1
= control target key start
LH: loop header
LB: loop body
LE: loop exit
PB: predicated region body
PF: predicated region fallthrough
CT: control target
= control target key end

     0   :  { %vm85_vm0 = vcmask 1045504   ;;  %v401_v5 = vmov 0   ;;  %vm78_vm1 = vcmask 97280   ;;  %s537_s0 = inlined_call_operand.vmem [shape: f32[12,256], index: 0, kind: input, shape index: {}]   ;;  %s538_s1 = inlined_call_operand.vmem [shape: bf16[32,12], index: 1, kind: input, shape index: {}]   ;;  %s539_s2 = inlined_call_operand.vmem [shape: f32[32,1], index: 2, kind: input, shape index: {}]   ;;  %s540_s3 = inlined_call_operand.vmem [shape: bf16[32,32], index: 3, kind: input, shape index: {}]   ;;  %s541_s4 = inlined_call_operand.vmem [shape: f32[32,1], index: 4, kind: input, shape index: {}]   ;;  %s542_s5 = inlined_call_operand.vmem [shape: bf16[4,32], index: 5, kind: input, shape index: {}]   ;;  %s543_s6 = inlined_call_operand.vmem [shape: f32[4,1], index: 6, kind: input, shape index: {}]   ;;  %s544_s7 = inlined_call_operand.vmem [shape: f32[4,1], index: 7, kind: input, shape index: {}]   ;;  %s545_s8 = inlined_call_operand.vmem [shape: f32[4,1], index: 8, kind: input, shape index: {}]   ;;  %s546_s9 = inlined_call_operand.hbm [shape: f32[4,256], index: 9, kind: output, shape index: {}]  }
   0x1   :  { %v35_v0 = vld [vmem:[%s537_s0 + $0x8] sm:$0xff]  ;;  %v37_v1 = vld [vmem:[%s537_s0 + $0x18] sm:$0xf]  ;;  %v34_v2 = vld [vmem:[%s537_s0] sm:$0xff]  ;;  %124 = vmatprep.mubr.bf16.mxu0 %v401_v5  ;;  %367 = vset.pattern.permute.xlu0 %v401_v5 }
   0x2   :  { %v39_v3 = vpack.c.bf16 %v37_v1, %v35_v0  ;;  %v36_v4 = vld [vmem:[%s537_s0 + $0x10] sm:$0xf]  ;;  %368 = vset.pattern.permute.xlu1 %v401_v5  ;;  %234 = vmatprep.mubr.bf16.mxu1 %v401_v5  ;;  %v44_v7 = vld [vmem:[%s539_s2] sm:$0xff]  ;;  %v45_v11 = vld [vmem:[%s539_s2 + $0x8] sm:$0xff] }
   0x3   :  { %v38_v6 = vpack.c.bf16 %v36_v4, %v34_v2  ;;  %v369_v9 = vld [vmem:[%s538_s1] sm:$0xff]   ;;  %50 = vperm.xlu0 %367, %v44_v7   ;;  %v46_v10 = vld [vmem:[%s539_s2 + $0x10] sm:$0xff]  ;;  %v47_v12 = vld [vmem:[%s539_s2 + $0x18] sm:$0xff] }
   0x4   :  { %357 = vmatprep.subr.msk.bf16.mxu0 %vm85_vm0, %v39_v3  ;;  %60 = vperm.xlu1 %368, %v46_v10  }
   0x5   :  { %v87_v8 = vsel %vm85_vm0, %v38_v6, 0 }
   0x6   :  { %93 = vmatpush1.bf16.msra.mxu0 %v87_v8 }
   0x7   :  { %55 = vperm.xlu0 %367, %v45_v11  }
   0x9   :  { %358 = vmatmul.mubr.msk.bf16.vlgmr.msra.gmra.mrb[0].mxu0 %vm78_vm1, %v369_v9 }
   0xa   :  { %14 = vsyncpa [#allocation3], 0  ;;  %134 = vmatprep.mubr.bf16.mxu0 %v401_v5  ;;  %v161_v13 = vld [vmem:[%s541_s4] sm:$0xff]  ;;  %65 = vperm.xlu1 %368, %v47_v12   ;;  %v162_v14 = vld [vmem:[%s541_s4 + $0x8] sm:$0xff]  ;;  %vm195_vm2 = vcmask 261120   ;;  %s402_s20 = smov [#allocation2]  }
   0xb   :  { %v370_v15 = vld [vmem:[%s538_s1 + $0x8] sm:$0xff]   ;;  %167 = vperm.xlu0 %367, %v161_v13   ;;  %v163_v16 = vld [vmem:[%s541_s4 + $0x10] sm:$0xff]  ;;  %v164_v17 = vld [vmem:[%s541_s4 + $0x18] sm:$0xff] }
   0xc   :  { %v268_v18 = vld [vmem:[%s543_s6] sm:$0xf]  ;;  %v372_v54 = vld [vmem:[%s540_s3 + $0x8] sm:$0xff]  }
   0xd   :  { %v320_v19 = vld [vmem:[%s544_s7] sm:$0xf] }
   0xe   :  { %172 = vperm.xlu1 %368, %v162_v14   ;;  %v328_v20 = vld [vmem:[%s545_s8] sm:$0xf] }
   0xf   :  { %177 = vperm.xlu0 %367, %v163_v16   ;;  %v371_v53 = vld [vmem:[%s540_s3] sm:$0xff]  }
  0x11   :  { %359 = vmatmul.mubr.msk.bf16.gmra.mrb[4].mxu0 %vm78_vm1, %v370_v15 }
  0x12   :  { %182 = vperm.xlu1 %368, %v164_v17   ;;  %309 = vmatprep.mubr.bf16.mxu0 %v401_v5 }
  0x13   :  { %271 = vperm.xlu0 %367, %v268_v18  }
  0x16   :  { %323 = vperm.xlu1 %368, %v320_v19  }
  0x17   :  { %331 = vperm.xlu0 %367, %v328_v20  }
  0x82   :  { %v51_v21 = vpop.permute.xlu0 %50 }
  0x83   :  { %v61_v30 = vpop.permute.xlu1 %60 }
  0x86   :  { %v56_v25 = vpop.permute.xlu0 %55 }
  0x89   :  { %v66_v41 = vpop.permute.xlu1 %65 }
  0x8a   :  { %v168_v55 = vpop.permute.xlu0 %167 }
  0x8d   :  { %v173_v59 = vpop.permute.xlu1 %172 }
  0x8e   :  { %v178_v6 = vpop.permute.xlu0 %177 }
  0x91   :  { %v183_v11 = vpop.permute.xlu1 %182 }
  0xdc   :  { %v126_v22 = vpop.f32.mrb[0].mxu0 }
  0xdd   :  { %v127_v23 = vadd.f32 %v126_v22, %v51_v21  ;;  %v128_v24 = vpop.f32.mrb[1].mxu0 }
  0xde   :  { %v129_v26 = vadd.f32 %v128_v24, %v51_v21  ;;  %v130_v27 = vpop.f32.mrb[2].mxu0  ;;  %v272_v24 = vpop.permute.xlu0 %271 }
  0xdf   :  { %v131_v28 = vadd.f32 %v130_v27, %v56_v25  ;;  %v132_v29 = vpop.f32.mrb[3].mxu0  ;;  %v145_v32 = vmax.f32 %v127_v23, 0.0  ;;  %v263_v23 = vld [vmem:[%s542_s5] sm:$0x3]  ;;  %s347_s5 = sshll.u32 %s402_s20, 4  ;;  %s348_s5 = int_to_ptr.vmem [resolvable:$true] %s347_s5 }
  0xe0   :  { %v133_v31 = vadd.f32 %v132_v29, %v56_v25  ;;  %v146_v34 = vmax.f32 %v129_v26, 0.0  ;;  %s377_s0 = scalar_lea.vmem %s348_s5, 128  ;;  %p382_p1 = scmp.lt.s32.totalorder %s348_s5, %s348_s5 }
  0xe1   :  { %v147_v33 = vmax.f32 %v131_v28, 0.0  ;;  %p378_p0 = scmp.ne.s32.totalorder %s348_s5, %s377_s0  ;;  %p383_p2 = scmp.lt.s32.totalorder %s377_s0, %s377_s0 }
  0xe2   :  { %v148_v35 = vmax.f32 %v133_v31, 0.0 }
  0xe3   :  { %v157_v36 = vpack.c.bf16 %v147_v33, %v145_v32  ;;  %v324_v32 = vpop.permute.xlu1 %323  ;;  %p384_p3 = por %p383_p2, %p382_p1 }
  0xe4   :  { %v136_v37 = vpop.f32.mrb[4].mxu0  ;;  %v158_v38 = vpack.c.bf16 %v148_v35, %v146_v34  ;;  %v332_v35 = vpop.permute.xlu0 %331 }
  0xe5   :  { %v137_v39 = vadd.f32 %v136_v37, %v61_v30  ;;  %v138_v40 = vpop.f32.mrb[5].mxu0  ;;  %p385_p4 = pnand %p384_p3, %p378_p0 }
  0xe6   :  { %v139_v42 = vadd.f32 %v138_v40, %v61_v30  ;;  %v140_v43 = vpop.f32.mrb[6].mxu0  ;;  %202 = vmatprep.subr.bf16.mxu1 %v158_v38 }
  0xe7   :  { %v141_v44 = vadd.f32 %v140_v43, %v66_v41  ;;  %v142_v45 = vpop.f32.mrb[7].mxu0  ;;  %203 = vmatpush1.bf16.msra.mxu1 %v157_v36  ;;  %v149_v47 = vmax.f32 %v137_v39, 0.0 }
  0xe8   :  { %v143_v46 = vadd.f32 %v142_v45, %v66_v41  ;;  %v150_v49 = vmax.f32 %v139_v42, 0.0 }
  0xe9   :  { %v151_v48 = vmax.f32 %v141_v44, 0.0 }
  0xea   :  { %v152_v50 = vmax.f32 %v143_v46, 0.0 }
  0xeb   :  { %v159_v51 = vpack.c.bf16 %v151_v48, %v149_v47 }
  0xec   :  { %v160_v52 = vpack.c.bf16 %v152_v50, %v150_v49 }
  0xee   :  { %204 = vmatprep.subr.bf16.mxu1 %v160_v52 }
  0xef   :  { %205 = vmatpush1.bf16.msra.mxu1 %v159_v51 }
  0xf2   :  { %362 = vmatmul.mubr.msk.bf16.vlgmr.msra.gmra.mrb[0].mxu1 %vm195_vm2, %v371_v53 }
  0xf3   :  { %244 = vmatprep.mubr.bf16.mxu1 %v401_v5 }
  0xfa   :  { %363 = vmatmul.mubr.msk.bf16.gmra.mrb[4].mxu1 %vm195_vm2, %v372_v54 }
 0x1c5   :  { %v236_v56 = vpop.f32.mrb[0].mxu1 }
 0x1c6   :  { %v237_v57 = vadd.f32 %v236_v56, %v168_v55  ;;  %v238_v58 = vpop.f32.mrb[1].mxu1 }
 0x1c7   :  { %v239_v60 = vadd.f32 %v238_v58, %v168_v55  ;;  %v240_v61 = vpop.f32.mrb[2].mxu1 }
 0x1c8   :  { %v241_v62 = vadd.f32 %v240_v61, %v173_v59  ;;  %v242_v63 = vpop.f32.mrb[3].mxu1  ;;  %v255_v1 = vmax.f32 %v237_v57, 0.0 }
 0x1c9   :  { %v243_v0 = vadd.f32 %v242_v63, %v173_v59  ;;  %v256_v3 = vmax.f32 %v239_v60, 0.0 }
 0x1ca   :  { %v257_v2 = vmax.f32 %v241_v62, 0.0 }
 0x1cb   :  { %v258_v4 = vmax.f32 %v243_v0, 0.0 }
 0x1cc   :  { %v264_v5 = vpack.c.bf16 %v257_v2, %v255_v1 }
 0x1cd   :  { %v265_v7 = vpack.c.bf16 %v258_v4, %v256_v3  ;;  %v246_v8 = vpop.f32.mrb[4].mxu1 }
 0x1ce   :  { %v247_v9 = vadd.f32 %v246_v8, %v178_v6  ;;  %v248_v10 = vpop.f32.mrb[5].mxu1 }
 0x1cf   :  { %v249_v12 = vadd.f32 %v248_v10, %v178_v6  ;;  %v250_v13 = vpop.f32.mrb[6].mxu1  ;;  %277 = vmatprep.subr.bf16.mxu0 %v265_v7 }
 0x1d0   :  { %v251_v14 = vadd.f32 %v250_v13, %v183_v11  ;;  %v252_v15 = vpop.f32.mrb[7].mxu1  ;;  %278 = vmatpush1.bf16.msra.mxu0 %v264_v5  ;;  %v259_v17 = vmax.f32 %v247_v9, 0.0 }
 0x1d1   :  { %v253_v16 = vadd.f32 %v252_v15, %v183_v11  ;;  %v260_v19 = vmax.f32 %v249_v12, 0.0 }
 0x1d2   :  { %v261_v18 = vmax.f32 %v251_v14, 0.0 }
 0x1d3   :  { %v262_v20 = vmax.f32 %v253_v16, 0.0 }
 0x1d4   :  { %v266_v21 = vpack.c.bf16 %v261_v18, %v259_v17 }
 0x1d5   :  { %v267_v22 = vpack.c.bf16 %v262_v20, %v260_v19 }
 0x1d7   :  { %279 = vmatprep.subr.bf16.mxu0 %v267_v22 }
 0x1d8   :  { %280 = vmatpush1.bf16.msra.mxu0 %v266_v21 }
 0x1db   :  { %364 = vmatmul.mubr.msk.bf16.vlgmr.msra.gmra.mrb[8].mxu0 %vm195_vm2, %v263_v23 }
 0x2ae   :  { %v311_v25 = vpop.f32.mrb[8].mxu0 }
 0x2af   :  { %v312_v26 = vadd.f32 %v311_v25, %v272_v24  ;;  %v313_v27 = vpop.f32.mrb[9].mxu0 }
 0x2b0   :  { %v314_v28 = vadd.f32 %v313_v27, %v272_v24  ;;  %v315_v29 = vpop.f32.mrb[10].mxu0 }
 0x2b1   :  { %373 = vtanh.f32 %v312_v26  ;;  %v316_v30 = vpop.f32.mrb[11].mxu0 }
 0x2b2   :  { %375 = vtanh.f32 %v314_v28 }
 0x2bb   :  { %v374_v31 = vpop.eup %373 }
 0x2bc   :  { %v376_v33 = vpop.eup %375  ;;  %v326_v34 = vmul.f32 %v374_v31, %v324_v32 }
 0x2bd   :  { %v327_v36 = vmul.f32 %v376_v33, %v324_v32 }
 0x2be   :  { %v334_v37 = vadd.f32 %v332_v35, %v326_v34 }
 0x2bf   :  { %v335_v38 = vadd.f32 %v332_v35, %v327_v36 }
 0x2c1   :  { %v338_v39 = vcombine.low %v334_v37, %v335_v38 }
 0x2c3   :  { %340 = vst [vmem:[#allocation2] sm:$0xff] %v338_v39 }
 0x2c4   :  { %388 = shalt.err (!%p385_p4)
}
 0x2c5   :  { %s389_s23 = scalar_lea.hbm %s546_s9, 128 }
 0x2c6   :  { %p390_p5 = scmp.ne.s32.totalorder %s546_s9, %s389_s23  ;;  %p393_p6 = scmp.lt.u32.totalorder %s389_s23, %s546_s9 }
 0x2c8   :  { %p395_p7 = pnand %p393_p6, %p390_p5 }
 0x2ca   :  { %398 = shalt.err (!%p395_p7)
}
 0x2cb   :  { %350 = dma.vmem_to_hbm [thread:$0]  %s348_s5, 128, %s546_s9, [#allocation3]  }
 0x2cc   :  { %399 = dma.done.wait [#allocation3], 128  }
 0x2cd   :  { %400 = vsyncadd [#allocation3], 4294967168 }
 0x2ce   :  { %354 = vsyncpa [#allocation3], 1 }

</bundles_post_ra>
